<compile_context>
chip_gen: v5e
topology: v5e:2x2
jax: 0.10.0
libtpu: 0.0.40
codegen_flags: <defaults>
</compile_context>

<pallas_src>
import jax
import jax.numpy as jnp
from jax.experimental import pallas as pl
from jax.experimental.pallas import tpu as pltpu

BN_EPS = 1e-5
INPUT_DIM = 256
HIDDEN_DIM = 1024
OUTPUT_DIM = 256
HIDDEN_CHUNK = 256                      # 4 chunks of 256 along the hidden dim


def _round_up(x, m):
    return (x + m - 1) // m * m


# ----------------------------------------------------------------------------
# Fused Pallas kernel: relu(bn2(fc2(relu(bn1(fc1(x)))))) with BN pre-folded,
# hidden dim chunked on grid axis 1, fc2 partials accumulated in f32 scratch.
# ----------------------------------------------------------------------------
def _expander_kernel(x_ref, w1_ref, b1_ref, w2_ref, b2_ref, o_ref, acc_ref):
    c = pl.program_id(1)

    @pl.when(c == 0)
    def _():
        acc_ref[...] = jnp.zeros_like(acc_ref)

    # fc1 (hidden chunk) + folded BN1 + ReLU  (bf16 MXU, f32 accumulation)
    x = x_ref[...].astype(jnp.bfloat16)
    h = jnp.dot(x, w1_ref[...], preferred_element_type=jnp.float32)
    h = jnp.maximum(h + b1_ref[...], 0.0)
    # TODO(synk): nn.Dropout(p=0.1) is identity in eval mode; training-mode RNG
    # masking (PyTorch RNG stream) is intentionally not reproduced here.

    # fc2 partial over this hidden chunk, accumulated in f32 scratch
    acc_ref[...] += jnp.dot(h.astype(jnp.bfloat16), w2_ref[...],
                            preferred_element_type=jnp.float32)

    # Epilogue (folded BN2 bias + ReLU) only once, at the last hidden chunk.
    @pl.when(c == pl.num_programs(1) - 1)
    def _():
        o_ref[...] = jnp.maximum(acc_ref[...] + b2_ref[...], 0.0)


def expander_forward(folded, x):
    """x: (B, 256) f32 -> (B, 256) f32. Single fused pallas_call."""
    B, D = x.shape
    assert D == INPUT_DIM

    # >=2 parallel M steps once B >= 16 (v7x megacore), 256-wide tiles when big.
    block_m = min(256, _round_up(pl.cdiv(B, 2), 8))
    b_pad = _round_up(B, block_m)
    if b_pad != B:
        x = jnp.pad(x, ((0, b_pad - B), (0, 0)))

    n_chunks = HIDDEN_DIM // HIDDEN_CHUNK
    grid = (b_pad // block_m, n_chunks)

    out = pl.pallas_call(
        _expander_kernel,
        out_shape=jax.ShapeDtypeStruct((b_pad, OUTPUT_DIM), jnp.float32),
        grid=grid,
        in_specs=[
            # x tile: constant across the hidden-chunk axis -> stays resident.
            pl.BlockSpec((block_m, INPUT_DIM), lambda i, c: (i, 0)),
            # w1 chunk: (256, 256) bf16, walks the hidden dim with c.
            pl.BlockSpec((INPUT_DIM, HIDDEN_CHUNK), lambda i, c: (0, c)),
            # b1 chunk: per-chunk slice of the folded bias.
            pl.BlockSpec((1, HIDDEN_CHUNK), lambda i, c: (0, c)),
            # w2 chunk: (256, 256) bf16, walks the hidden dim with c.
            pl.BlockSpec((HIDDEN_CHUNK, OUTPUT_DIM), lambda i, c: (c, 0)),
            # b2: constant block.
            pl.BlockSpec((1, OUTPUT_DIM), lambda i, c: (0, 0)),
        ],
        # Output block constant across c -> resident accumpattern, written back
        # to HBM once per M step.
        out_specs=pl.BlockSpec((block_m, OUTPUT_DIM), lambda i, c: (i, 0)),
        scratch_shapes=[pltpu.VMEM((block_m, OUTPUT_DIM), jnp.float32)],
        compiler_params=pltpu.CompilerParams(
            dimension_semantics=("parallel", "arbitrary")),
    )(x, folded["w1"], folded["b1"], folded["w2"], folded["b2"])

    return out[:B] if b_pad != B else out


# ----------------------------------------------------------------------------
# Parameter construction and BN(eval) folding (done once, outside jit)
# ----------------------------------------------------------------------------
def init_params(key):
    ks = jax.random.split(key, 12)
    return dict(
        fc1_w=jax.random.normal(ks[0], (HIDDEN_DIM, INPUT_DIM), jnp.float32)
        * (1.0 / INPUT_DIM) ** 0.5,
        fc1_b=0.01 * jax.random.normal(ks[1], (HIDDEN_DIM,), jnp.float32),
        bn1_gamma=1.0 + 0.1 * jax.random.normal(ks[2], (HIDDEN_DIM,), jnp.float32),
        bn1_beta=0.05 * jax.random.normal(ks[3], (HIDDEN_DIM,), jnp.float32),
        bn1_mean=0.05 * jax.random.normal(ks[4], (HIDDEN_DIM,), jnp.float32),
        bn1_var=1.0 + 0.1 * jax.random.uniform(ks[5], (HIDDEN_DIM,), jnp.float32),
        fc2_w=jax.random.normal(ks[6], (OUTPUT_DIM, HIDDEN_DIM), jnp.float32)
        * (1.0 / HIDDEN_DIM) ** 0.5,
        fc2_b=0.01 * jax.random.normal(ks[7], (OUTPUT_DIM,), jnp.float32),
        bn2_gamma=1.0 + 0.1 * jax.random.normal(ks[8], (OUTPUT_DIM,), jnp.float32),
        bn2_beta=0.05 * jax.random.normal(ks[9], (OUTPUT_DIM,), jnp.float32),
        bn2_mean=0.05 * jax.random.normal(ks[10], (OUTPUT_DIM,), jnp.float32),
        bn2_var=1.0 + 0.1 * jax.random.uniform(ks[11], (OUTPUT_DIM,), jnp.float32),
    )


def fold_params(p):
    """Fold eval-mode BatchNorm1d into the preceding Linear; pre-transpose to
    (in, out); cast weights to bf16 (biases stay f32)."""
    s1 = p["bn1_gamma"] / jnp.sqrt(p["bn1_var"] + BN_EPS)
    w1 = (p["fc1_w"].T * s1[None, :]).astype(jnp.bfloat16)          # (256, 1024)
    b1 = ((p["fc1_b"] - p["bn1_mean"]) * s1 + p["bn1_beta"]
          ).reshape(1, HIDDEN_DIM).astype(jnp.float32)
    s2 = p["bn2_gamma"] / jnp.sqrt(p["bn2_var"] + BN_EPS)
    w2 = (p["fc2_w"].T * s2[None, :]).astype(jnp.bfloat16)          # (1024, 256)
    b2 = ((p["fc2_b"] - p["bn2_mean"]) * s2 + p["bn2_beta"]
          ).reshape(1, OUTPUT_DIM).astype(jnp.float32)
    return dict(w1=w1, b1=b1, w2=w2, b2=b2)


def reference_forward(p, x):
    """Pure-JAX f32 reference (eval-mode semantics of the PyTorch module)."""
    h = x @ p["fc1_w"].T + p["fc1_b"]
    h = (h - p["bn1_mean"]) / jnp.sqrt(p["bn1_var"] + BN_EPS) * p["bn1_gamma"] \
        + p["bn1_beta"]
    h = jnp.maximum(h, 0.0)
    y = h @ p["fc2_w"].T + p["fc2_b"]
    y = (y - p["bn2_mean"]) / jnp.sqrt(p["bn2_var"] + BN_EPS) * p["bn2_gamma"] \
        + p["bn2_beta"]
    return jnp.maximum(y, 0.0)


if __name__ == "__main__":
    params = init_params(jax.random.PRNGKey(0))
    folded = fold_params(params)                       # once, outside jit
    x = jax.random.normal(jax.random.PRNGKey(0), (8, INPUT_DIM), jnp.float32)

    fwd = jax.jit(expander_forward)
    out = jax.block_until_ready(fwd(folded, x))

    assert out.shape == (8, OUTPUT_DIM) and out.dtype == jnp.float32
    assert bool(jnp.all(jnp.isfinite(out)))

    # bf16 weight/activation rounding inside the kernel (f32 accumulation)
    # means parity with the f32 reference is at the ~1e-2..1e-1 level.
    ref = reference_forward(params, x)
    max_err = float(jnp.max(jnp.abs(out - ref)))
    assert max_err < 1e-1, f"mismatch vs reference: {max_err}"

    print("KERNEL_OK")
</pallas_src>

<mosaic_0001>
module attributes {stable_mosaic.version = 11 : i64} {
  func.func @_expander_kernel(%arg0: i32, %arg1: i32, %arg2: memref<8x256xf32, #tpu.memory_space<vmem>>, %arg3: memref<256x256xbf16, #tpu.memory_space<vmem>>, %arg4: memref<1x256xf32, #tpu.memory_space<vmem>>, %arg5: memref<256x256xbf16, #tpu.memory_space<vmem>>, %arg6: memref<1x256xf32, #tpu.memory_space<vmem>>, %arg7: memref<8x256xf32, #tpu.memory_space<vmem>>, %arg8: memref<8x256xf32, #tpu.memory_space<vmem>>) attributes {dimension_semantics = [#tpu.dimension_semantics<parallel>, #tpu.dimension_semantics<arbitrary>], iteration_bounds = array<i64: 1, 4>, scalar_prefetch = 0 : i64, scratch_operands = 1 : i64, tpu.core_type = #tpu.core_type<tc>, window_params = [{transform_indices = @transform_0, window_bounds = array<i64: 8, 256>}, {transform_indices = @transform_1, window_bounds = array<i64: 256, 256>}, {transform_indices = @transform_2, window_bounds = array<i64: 1, 256>}, {transform_indices = @transform_3, window_bounds = array<i64: 256, 256>}, {pipeline_mode = #tpu.pipeline_mode<synchronous>, transform_indices = @transform_4, window_bounds = array<i64: 1, 256>}, {transform_indices = @transform_5, window_bounds = array<i64: 8, 256>}]} {
    %c0_i32 = arith.constant 0 : i32
    %0 = arith.cmpi eq, %arg1, %c0_i32 : i32
    %1 = arith.extui %0 : i1 to i32
    %c0_i32_0 = arith.constant 0 : i32
    %2 = arith.cmpi ne, %1, %c0_i32_0 : i32
    scf.if %2 {
      %cst_15 = arith.constant 0.000000e+00 : f32
      %21 = vector.broadcast %cst_15 : f32 to vector<8x256xf32>
      %c0_16 = arith.constant 0 : index
      %c0_17 = arith.constant 0 : index
      %22 = vector.load %arg8[%c0_16, %c0_17] : memref<8x256xf32, #tpu.memory_space<vmem>>, vector<8x256xf32>
      tpu.vector_store %arg8[%c0_16, %c0_17], %21 {strides = array<i32>} : memref<8x256xf32, #tpu.memory_space<vmem>>, vector<8x256xf32>,
    } else {
    }
    %c0 = arith.constant 0 : index
    %c0_1 = arith.constant 0 : index
    %3 = vector.load %arg2[%c0, %c0_1] : memref<8x256xf32, #tpu.memory_space<vmem>>, vector<8x256xf32>
    %4 = arith.truncf %3 : vector<8x256xf32> to vector<8x256xbf16>
    %c0_2 = arith.constant 0 : index
    %c0_3 = arith.constant 0 : index
    %5 = vector.load %arg3[%c0_2, %c0_3] : memref<256x256xbf16, #tpu.memory_space<vmem>>, vector<256x256xbf16>
    %cst = arith.constant dense<0.000000e+00> : vector<8x256xf32>
    %6 = tpu.matmul %4, %5, %cst {dimension_numbers = #tpu.dot_dimension_numbers<[1], [0], [0], [1], [0, 0, 1, 1], [], []>} : vector<8x256xbf16>, vector<256x256xbf16>, vector<8x256xf32> -> vector<8x256xf32>
    %c0_4 = arith.constant 0 : index
    %c0_5 = arith.constant 0 : index
    %7 = vector.load %arg4[%c0_4, %c0_5] : memref<1x256xf32, #tpu.memory_space<vmem>>, vector<1x256xf32>
    %8 = vector.broadcast %7 : vector<1x256xf32> to vector<8x256xf32>
    %9 = arith.addf %6, %8 : vector<8x256xf32>
    %cst_6 = arith.constant 0.000000e+00 : f32
    %10 = vector.broadcast %cst_6 : f32 to vector<8x256xf32>
    %11 = arith.maximumf %9, %10 : vector<8x256xf32>
    %c0_7 = arith.constant 0 : index
    %c0_8 = arith.constant 0 : index
    %12 = vector.load %arg8[%c0_7, %c0_8] : memref<8x256xf32, #tpu.memory_space<vmem>>, vector<8x256xf32>
    %13 = arith.truncf %11 : vector<8x256xf32> to vector<8x256xbf16>
    %c0_9 = arith.constant 0 : index
    %c0_10 = arith.constant 0 : index
    %14 = vector.load %arg5[%c0_9, %c0_10] : memref<256x256xbf16, #tpu.memory_space<vmem>>, vector<256x256xbf16>
    %cst_11 = arith.constant dense<0.000000e+00> : vector<8x256xf32>
    %15 = tpu.matmul %13, %14, %cst_11 {dimension_numbers = #tpu.dot_dimension_numbers<[1], [0], [0], [1], [0, 0, 1, 1], [], []>} : vector<8x256xbf16>, vector<256x256xbf16>, vector<8x256xf32> -> vector<8x256xf32>
    %16 = arith.addf %12, %15 : vector<8x256xf32>
    %c0_12 = arith.constant 0 : index
    %c0_13 = arith.constant 0 : index
    %17 = vector.load %arg8[%c0_12, %c0_13] : memref<8x256xf32, #tpu.memory_space<vmem>>, vector<8x256xf32>
    tpu.vector_store %arg8[%c0_12, %c0_13], %16 {strides = array<i32>} : memref<8x256xf32, #tpu.memory_space<vmem>>, vector<8x256xf32>,
    %c3_i32 = arith.constant 3 : i32
    %18 = arith.cmpi eq, %arg1, %c3_i32 : i32
    %19 = arith.extui %18 : i1 to i32
    %c0_i32_14 = arith.constant 0 : i32
    %20 = arith.cmpi ne, %19, %c0_i32_14 : i32
    scf.if %20 {
      %c0_15 = arith.constant 0 : index
      %c0_16 = arith.constant 0 : index
      %21 = vector.load %arg8[%c0_15, %c0_16] : memref<8x256xf32, #tpu.memory_space<vmem>>, vector<8x256xf32>
      %c0_17 = arith.constant 0 : index
      %c0_18 = arith.constant 0 : index
      %22 = vector.load %arg6[%c0_17, %c0_18] : memref<1x256xf32, #tpu.memory_space<vmem>>, vector<1x256xf32>
      %23 = vector.broadcast %22 : vector<1x256xf32> to vector<8x256xf32>
      %24 = arith.addf %21, %23 : vector<8x256xf32>
      %cst_19 = arith.constant 0.000000e+00 : f32
      %25 = vector.broadcast %cst_19 : f32 to vector<8x256xf32>
      %26 = arith.maximumf %24, %25 : vector<8x256xf32>
      %c0_20 = arith.constant 0 : index
      %c0_21 = arith.constant 0 : index
      %27 = vector.load %arg7[%c0_20, %c0_21] : memref<8x256xf32, #tpu.memory_space<vmem>>, vector<8x256xf32>
      tpu.vector_store %arg7[%c0_20, %c0_21], %26 {strides = array<i32>} : memref<8x256xf32, #tpu.memory_space<vmem>>, vector<8x256xf32>,
    } else {
    }
    return
  }
  func.func @transform_0(%arg0: i32, %arg1: i32) -> (i32, i32) {
    %c0_i32 = arith.constant 0 : i32
    %c0_i32_0 = arith.constant 0 : i32
    return %arg0, %c0_i32 : i32, i32
  }
  func.func @transform_1(%arg0: i32, %arg1: i32) -> (i32, i32) {
    %c0_i32 = arith.constant 0 : i32
    %c0_i32_0 = arith.constant 0 : i32
    return %c0_i32, %arg1 : i32, i32
  }
  func.func @transform_2(%arg0: i32, %arg1: i32) -> (i32, i32) {
    %c0_i32 = arith.constant 0 : i32
    %c0_i32_0 = arith.constant 0 : i32
    return %c0_i32, %arg1 : i32, i32
  }
  func.func @transform_3(%arg0: i32, %arg1: i32) -> (i32, i32) {
    %c0_i32 = arith.constant 0 : i32
    %c0_i32_0 = arith.constant 0 : i32
    return %arg1, %c0_i32 : i32, i32
  }
  func.func @transform_4(%arg0: i32, %arg1: i32) -> (i32, i32) {
    %c0_i32 = arith.constant 0 : i32
    %c0_i32_0 = arith.constant 0 : i32
    %c0_i32_1 = arith.constant 0 : i32
    return %c0_i32, %c0_i32_0 : i32, i32
  }
  func.func @transform_5(%arg0: i32, %arg1: i32) -> (i32, i32) {
    %c0_i32 = arith.constant 0 : i32
    %c0_i32_0 = arith.constant 0 : i32
    return %arg0, %c0_i32 : i32, i32
  }
}

</mosaic_0001>

<bundles_post_ra>
// kernel: expander_forward.1
= control target key start
LH: loop header
LB: loop body
LE: loop exit
PB: predicated region body
PF: predicated region fallthrough
CT: control target
= control target key end

     0   :  { %s2071_s0 = inlined_call_operand.hbm [shape: f32[8,256], index: 0, kind: input, shape index: {}]   ;;  %s2072_s1 = inlined_call_operand.hbm [shape: bf16[256,1024], index: 1, kind: input, shape index: {}]   ;;  %s2073_s2 = inlined_call_operand.hbm [shape: f32[1,1024], index: 2, kind: input, shape index: {}]   ;;  %s2074_s3 = inlined_call_operand.hbm [shape: bf16[1024,256], index: 3, kind: input, shape index: {}]   ;;  %s2075_s4 = inlined_call_operand.hbm [shape: f32[1,256], index: 4, kind: input, shape index: {}]   ;;  %s2076_s5 = inlined_call_operand.hbm [shape: f32[8,256], index: 5, kind: output, shape index: {}]  }
   0x1   :  { %2081 = sst [smem:[#allocation20_spill]] %s2072_s1 }
   0x2   :  { %2082 = sst [smem:[#allocation21_spill]] %s2075_s4 }
   0x3   :  { %10 = vsyncpa [#allocation4], 0 }
   0x4   :  { %11 = vsyncpa [#allocation7], 0 }
   0x5   :  { %13 = vsyncpa [#allocation7 + $0x1], 0 }
   0x6   :  { %14 = vsyncpa [#allocation10], 0 }
   0x7   :  { %16 = vsyncpa [#allocation10 + $0x1], 0 }
   0x8   :  { %17 = vsyncpa [#allocation5], 0  ;;  %s1769_s18 = smov 0   ;;  %s1771_s19 = smov 0  }
   0x9   :  { %s1773_s20 = smov 0   ;;  %s1775_s21 = smov 0  }
   0xa   :  { %s1777_s22 = smov 0   ;;  %s1779_s23 = smov 0  }
   0xb LB: > { %s1798_s24 = sadd.s32 4294967295, %s1730_s23   ;;  %s68_s25 = sadd.s32 1, %s1718_s20  ;;  %s1730_s23 = sphi %s1779_s23, %s23_s23   ;;  %s1726_s22 = sphi %s1777_s22, %s2101_s22   ;;  %s1722_s21 = sphi %s1775_s21, %s2100_s21   ;;  %s1718_s20 = sphi %s1773_s20, %s2099_s20   ;;  %s1714_s19 = sphi %s1771_s19, %s2098_s19   ;;  %s1710_s18 = sphi %s1769_s18, %s2097_s18  }
   0xc   : > { %p75_p0 = scmp.ne.s32.totalorder %s1718_s20, %s1714_s19  ;;  %p76_p1 = scmp.eq.s32.totalorder %s1730_s23, 0 }
   0xd   : > { %p81_p2 = scmp.ne.s32.totalorder %s1714_s19, %s1710_s18  ;;  %p82_p3 = scmp.eq.s32.totalorder %s1798_s24, 0 }
   0xe   : > { %p1806_p4 = por %p76_p1, %p75_p0  ;;  %p1041_p5 = scmp.ge.s32.totalorder %s1730_s23, 1 }
   0xf   : > { %p1813_p6 = por %p82_p3, %p81_p2  ;;  %p191_p7 = scmp.lt.s32.totalorder %s1730_s23, 5 }
  0x10   : > { %s2085_s4 = sld [smem:[#allocation21_spill]]  ;;  %s1732_s7 = smov [#allocation11]  }
  0x11   : > { %p1821_p8 = pnand %p1041_p5, %p191_p7  ;;  %s220_s8 = sshll.u32 %s1732_s7, 4  ;;  %s221_s8 = int_to_ptr.vmem [resolvable:$true] %s220_s8 }
  0x12   : > { %p1426_p10 = scmp.lt.s32.totalorder %s1730_s23, 4  ;;  %s32_s11 = sadd.s32 1, %s1726_s22 }
  0x13   : > { %p1407_p9 = pneg %p1821_p8  ;;  %p33_p13 = scmp.ge.s32.totalorder %s32_s11, 4 }
  0x14   : > { %p1836_p12 = pnand %p1426_p10, %p1806_p4  ;;  %s2078_s12 = sand.u32 1, %s1730_s23  }
  0x15   : > { %p1830_p11 = pnand %p1407_p9, %p82_p3  ;;  %s233_s13 = sand.u32 1, %s1718_s20  }
  0x16   : > { %s218_s30 = sshll.u32 %s2085_s4, 4  ;;  %s2103_s11 = smov (%p33_p13, %s32_s11), 0  ;;  %s219_s30 = int_to_ptr.hbm [resolvable:$true] %s218_s30 }
  0x17   : > { %1413 = dma.hbm_to_vmem [thread:$0]  (!%p1830_p11), %s219_s30, 32, %s221_s8, [#allocation10]  }
  0x18   : > { %2089 = sst [smem:[#allocation18_spill]] %s2103_s11  ;;  %s1847_s14 = sshll.u32 %s233_s13, 8 }
  0x19   : > { %s65_s15 = ssub.s32 %s1726_s22, %s2103_s11  ;;  %s1322_s16 = sshll.u32 %s1726_s22, 3 }
  0x1a   : > { %p66_p0 = scmp.eq.s32.totalorder %s65_s15, 0  ;;  %s2090_s1 = sld [smem:[#allocation20_spill]] }
  0x1b   : > { %s235_s28 = scalar_lea.vmem [#allocation6], %s1847_s14  ;;  %s232_s8 = scalar_lea.sflag [#allocation7], %s2078_s12 }
  0x1c   : > { %s243_s29 = sshll.u32 %s235_s28, 4  ;;  %s1733_s4 = smov 512   ;;  %s244_s29 = int_to_ptr.vmem [resolvable:$true] %s243_s29 }
  0x1d   : > { %s1859_s30 = scalar_select %p66_p0, %s1718_s20, %s68_s25  }
  0x1e   : > { %s2079_s11 = smov 128   ;;  %s2080_s15 = smov 8  }
  0x1f   : > { %2091 = sst [smem:[#allocation19_spill]] %s1859_s30  ;;  %s206_s25 = sshll.u32 %s2071_s0, 4  ;;  %s207_s25 = int_to_ptr.hbm [resolvable:$true] %s206_s25 }
  0x20   : > { %s240_s26 = scalar_lea.hbm %s2090_s1, %s1322_s16  ;;  %s1048_s18 = sshll.u32 %s233_s13, 1 }
  0x21   : > { %s241_s7 = sshll.u32 %s240_s26, 4  ;;  %s1736_s26 = smov [#allocation3]   ;;  %s242_s7 = int_to_ptr.hbm [resolvable:$true] %s241_s7 }
  0x22   : > { %1417 = dma.hbm_to_vmem [thread:$0]  (!%p1836_p12), %s242_s7, 4096, %s244_s29, %s232_s8, %s1733_s4, %s2079_s11, %s2080_s15  }
  0x23   : > { %s208_s28 = sshll.u32 %s1736_s26, 4  ;;  %s1049_s12 = sshll.u32 %s1726_s22, 1  ;;  %s209_s28 = int_to_ptr.vmem [resolvable:$true] %s208_s28 }
  0x24   : > { %1410 = dma.hbm_to_vmem [thread:$0]  (!%p1830_p11), %s207_s25, 256, %s209_s28, [#allocation4]  }
  0x25   : > { %s261_s4 = scalar_lea.hbm %s2073_s2, %s1049_s12  ;;  %s257_s29 = scalar_lea.vmem [#allocation8], %s1048_s18 }
  0x26   : > { %s265_s7 = sshll.u32 %s257_s29, 4  ;;  %s263_s16 = sshll.u32 %s261_s4, 4  ;;  %s266_s7 = int_to_ptr.vmem [resolvable:$true] %s265_s7  ;;  %s264_s16 = int_to_ptr.hbm [resolvable:$true] %s263_s16 }
  0x27   : > { %1420 = dma.hbm_to_vmem [thread:$0]  (!%p1836_p12), %s264_s16, 32, %s266_s7, %s232_s8  }
  0x28   : > { %s1324_s13 = sshll.u32 %s1726_s22, 8  ;;  %s276_s9 = scalar_lea.vmem [#allocation9], %s1847_s14 }
  0x29   : > { %s282_s11 = scalar_lea.hbm %s2074_s3, %s1324_s13  ;;  %s285_s15 = sshll.u32 %s276_s9, 4  ;;  %s286_s15 = int_to_ptr.vmem [resolvable:$true] %s285_s15 }
  0x2a   : > { %s283_s25 = sshll.u32 %s282_s11, 4  ;;  %s2092_s1 = sand.u32 1, %s1730_s23   ;;  %s284_s25 = int_to_ptr.hbm [resolvable:$true] %s283_s25 }
  0x2b   : > { %s273_s30 = scalar_lea.sflag [#allocation10], %s2092_s1  ;;  %s2093_s12 = smov 8  }
  0x2c   : > { %s2094_s18 = smov 128   ;;  %297 = sbr.rel (%p1821_p8) target bundleno = 402 (0x192), region = 40 }
  0x2d   : > { %1423 = dma.hbm_to_vmem [thread:$0]  (!%p1836_p12), %s284_s25, 4096, %s286_s15, %s273_s30, %s2094_s18, %s2094_s18, %s2093_s12  }
  0x31   : > { %1689 = dma.done.wait (%p82_p3), [#allocation4], 256  }
  0x32   : > { %1691 = vsyncadd (%p82_p3), [#allocation4], 4294967040  ;;  %s304_s11 = sand.u32 1, %s1798_s24   ;;  %s306_s14 = sand.u32 1, %s1714_s19  }
  0x33   : > { %s1056_s8 = sshll.u32 %s306_s14, 8  ;;  %s305_s10 = scalar_lea.sflag [#allocation7], %s304_s11 }
  0x34   : > { %s1898_s28 = scalar_lea.vmem [#allocation6], %s1056_s8 }
  0x35   : > { %1693 = dma.done.wait (%p1813_p6), %s305_s10, 4128  }
  0x36   : > { %1695 = vsyncadd (%p1813_p6), %s305_s10, 4294963168  ;;  %s1904_s6 = sshll.u32 %s306_s14, 1  ;;  %s325_s4 = scalar_lea.sflag [#allocation10], %s304_s11 }
  0x37   : > { %s318_s15 = scalar_lea.vmem [#allocation8], %s1904_s6  ;;  %s1907_s29 = scalar_lea.vmem [#allocation9], %s1056_s8 }
  0x38   : > { %1697 = dma.done.wait (%p1813_p6), %s325_s4, 4096  }
  0x39   : > { %1699 = vsyncadd (%p1813_p6), %s325_s4, 4294963200 }
  0x3a   : > { %1701 = dma.done.wait (%p82_p3), [#allocation10], 32  }
  0x3b   : > { %1703 = vsyncadd (%p82_p3), [#allocation10], 4294967264  ;;  %p1060_p1 = scmp.ne.s32.totalorder %s1722_s21, 0 }
  0x3d   : > { %372 = sbr.rel (%p1060_p1) target bundleno = 69 (0x45), region = 64 }
  0x42   : > { %v1737_v0 = vmov 0.0  }
  0x43   : > { %373 = vst [vmem:[#allocation2] sm:$0xff] %v1737_v0 }
  0x44   : > { %374 = vst [vmem:[#allocation2 + $0x8] sm:$0xff] %v1737_v0 }
  0x45 PF: > { %v1119_v1 = vld [vmem:[%s1898_s28 + $0x70] sm:$0xf]  ;;  %v1340_v2 = vld [vmem:[%s1898_s28 + $0x74] sm:$0xf0]  ;;  %v1339_v6 = vld [vmem:[%s1898_s28 + $0x74] sm:$0xf] }
  0x46   : > { %v1183_v3 = vld [vmem:[%s1898_s28 + $0xf0] sm:$0xf]  ;;  %v1120_v4 = vor.u32 %v1340_v2, %v1119_v1  ;;  %v1356_v5 = vld [vmem:[%s1898_s28 + $0xf4] sm:$0xf0]  ;;  %v1121_v7 = vld [vmem:[%s1898_s28 + $0x78] sm:$0xf0] }
  0x47   : > { %v1184_v8 = vor.u32 %v1356_v5, %v1183_v3  ;;  %v1124_v9 = vor.u32 %v1339_v6, %v1121_v7  ;;  %v1355_v10 = vld [vmem:[%s1898_s28 + $0xf4] sm:$0xf]  ;;  %v1185_v11 = vld [vmem:[%s1898_s28 + $0xf8] sm:$0xf0]  ;;  %v1111_v12 = vld [vmem:[%s1898_s28 + $0x60] sm:$0xf] }
  0x48   : > { %577 = vmatpush.bf16.msra.mxu0 %v1120_v4  ;;  %v1188_v13 = vor.u32 %v1355_v10, %v1185_v11  ;;  %v1338_v14 = vld [vmem:[%s1898_s28 + $0x64] sm:$0xf0]  ;;  %v1175_v15 = vld [vmem:[%s1898_s28 + $0xe0] sm:$0xf]  ;;  %v1337_v19 = vld [vmem:[%s1898_s28 + $0x64] sm:$0xf] }
  0x49   : > { %v1354_v16 = vld [vmem:[%s1898_s28 + $0xe4] sm:$0xf0]  ;;  %590 = vmatpush.bf16.msra.mxu1 %v1184_v8  ;;  %603 = vmatpush.bf16.msra.mxu2 %v1124_v9  ;;  %v1112_v17 = vor.u32 %v1338_v14, %v1111_v12  ;;  %v1113_v20 = vld [vmem:[%s1898_s28 + $0x68] sm:$0xf0]  ;;  %v1353_v21 = vld [vmem:[%s1898_s28 + $0xe4] sm:$0xf] }
  0x4a   : > { %v1176_v18 = vor.u32 %v1354_v16, %v1175_v15  ;;  %616 = vmatpush.bf16.msra.mxu3 %v1188_v13  ;;  %v1116_v22 = vor.u32 %v1337_v19, %v1113_v20  ;;  %v1177_v23 = vld [vmem:[%s1898_s28 + $0xe8] sm:$0xf0]  ;;  %v1103_v24 = vld [vmem:[%s1898_s28 + $0x50] sm:$0xf]  ;;  %v1336_v25 = vld [vmem:[%s1898_s28 + $0x54] sm:$0xf0] }
  0x4b   : > { %v1180_v26 = vor.u32 %v1353_v21, %v1177_v23  ;;  %v1167_v27 = vld [vmem:[%s1898_s28 + $0xd0] sm:$0xf]  ;;  %v1352_v28 = vld [vmem:[%s1898_s28 + $0xd4] sm:$0xf0]  ;;  %v1335_v29 = vld [vmem:[%s1898_s28 + $0x54] sm:$0xf]  ;;  %v1104_v30 = vor.u32 %v1336_v25, %v1103_v24 }
  0x4c   : > { %578 = vmatpush.bf16.msra.mxu0 %v1112_v17  ;;  %v1105_v31 = vld [vmem:[%s1898_s28 + $0x58] sm:$0xf0]  ;;  %v1351_v32 = vld [vmem:[%s1898_s28 + $0xd4] sm:$0xf]  ;;  %v1168_v34 = vor.u32 %v1352_v28, %v1167_v27  ;;  %v1095_v36 = vld [vmem:[%s1898_s28 + $0x40] sm:$0xf] }
  0x4d   : > { %v1169_v33 = vld [vmem:[%s1898_s28 + $0xd8] sm:$0xf0]  ;;  %591 = vmatpush.bf16.msra.mxu1 %v1176_v18  ;;  %604 = vmatpush.bf16.msra.mxu2 %v1116_v22  ;;  %v1108_v35 = vor.u32 %v1335_v29, %v1105_v31  ;;  %v1334_v37 = vld [vmem:[%s1898_s28 + $0x44] sm:$0xf0]  ;;  %v1159_v38 = vld [vmem:[%s1898_s28 + $0xc0] sm:$0xf] }
  0x4e   : > { %617 = vmatpush.bf16.msra.mxu3 %v1180_v26  ;;  %v1172_v39 = vor.u32 %v1351_v32, %v1169_v33  ;;  %v1350_v40 = vld [vmem:[%s1898_s28 + $0xc4] sm:$0xf0]  ;;  %v1333_v41 = vld [vmem:[%s1898_s28 + $0x44] sm:$0xf]  ;;  %v1097_v42 = vld [vmem:[%s1898_s28 + $0x48] sm:$0xf0]  ;;  %v1096_v45 = vor.u32 %v1334_v37, %v1095_v36 }
  0x4f   : > { %v1349_v43 = vld [vmem:[%s1898_s28 + $0xc4] sm:$0xf]  ;;  %v1161_v44 = vld [vmem:[%s1898_s28 + $0xc8] sm:$0xf0]  ;;  %v1160_v46 = vor.u32 %v1350_v40, %v1159_v38  ;;  %v1100_v47 = vor.u32 %v1333_v41, %v1097_v42  ;;  %v1087_v48 = vld [vmem:[%s1898_s28 + $0x30] sm:$0xf] }
  0x50   : > { %579 = vmatpush.bf16.msra.mxu0 %v1104_v30  ;;  %v1332_v49 = vld [vmem:[%s1898_s28 + $0x34] sm:$0xf0]  ;;  %v1151_v50 = vld [vmem:[%s1898_s28 + $0xb0] sm:$0xf]  ;;  %v1164_v51 = vor.u32 %v1349_v43, %v1161_v44  ;;  %v1331_v53 = vld [vmem:[%s1898_s28 + $0x34] sm:$0xf] }
  0x51   : > { %592 = vmatpush.bf16.msra.mxu1 %v1168_v34  ;;  %605 = vmatpush.bf16.msra.mxu2 %v1108_v35  ;;  %v1348_v52 = vld [vmem:[%s1898_s28 + $0xb4] sm:$0xf0]  ;;  %v1089_v54 = vld [vmem:[%s1898_s28 + $0x38] sm:$0xf0]  ;;  %v1347_v55 = vld [vmem:[%s1898_s28 + $0xb4] sm:$0xf]  ;;  %v1088_v57 = vor.u32 %v1332_v49, %v1087_v48 }
  0x52   : > { %618 = vmatpush.bf16.msra.mxu3 %v1172_v39  ;;  %v1153_v56 = vld [vmem:[%s1898_s28 + $0xb8] sm:$0xf0]  ;;  %v1152_v58 = vor.u32 %v1348_v52, %v1151_v50  ;;  %v1092_v59 = vor.u32 %v1331_v53, %v1089_v54  ;;  %v1079_v60 = vld [vmem:[%s1898_s28 + $0x20] sm:$0xf]  ;;  %v1330_v61 = vld [vmem:[%s1898_s28 + $0x24] sm:$0xf0] }
  0x53   : > { %v1143_v62 = vld [vmem:[%s1898_s28 + $0xa0] sm:$0xf]  ;;  %v1156_v63 = vor.u32 %v1347_v55, %v1153_v56  ;;  %v1346_v0 = vld [vmem:[%s1898_s28 + $0xa4] sm:$0xf0]  ;;  %v1329_v1 = vld [vmem:[%s1898_s28 + $0x24] sm:$0xf]  ;;  %v1080_v5 = vor.u32 %v1330_v61, %v1079_v60 }
  0x54   : > { %580 = vmatpush.bf16.msra.mxu0 %v1096_v45  ;;  %v1081_v2 = vld [vmem:[%s1898_s28 + $0x28] sm:$0xf0]  ;;  %v1345_v3 = vld [vmem:[%s1898_s28 + $0xa4] sm:$0xf]  ;;  %v1144_v6 = vor.u32 %v1346_v0, %v1143_v62  ;;  %v1071_v8 = vld [vmem:[%s1898_s28 + $0x10] sm:$0xf] }
  0x55   : > { %593 = vmatpush.bf16.msra.mxu1 %v1160_v46  ;;  %606 = vmatpush.bf16.msra.mxu2 %v1100_v47  ;;  %v1145_v4 = vld [vmem:[%s1898_s28 + $0xa8] sm:$0xf0]  ;;  %v1084_v7 = vor.u32 %v1329_v1, %v1081_v2  ;;  %v1328_v9 = vld [vmem:[%s1898_s28 + $0x14] sm:$0xf0]  ;;  %v1135_v10 = vld [vmem:[%s1898_s28 + $0x90] sm:$0xf] }
  0x56   : > { %619 = vmatpush.bf16.msra.mxu3 %v1164_v51  ;;  %v1148_v11 = vor.u32 %v1345_v3, %v1145_v4  ;;  %v1344_v12 = vld [vmem:[%s1898_s28 + $0x94] sm:$0xf0]  ;;  %v1327_v13 = vld [vmem:[%s1898_s28 + $0x14] sm:$0xf]  ;;  %v1073_v14 = vld [vmem:[%s1898_s28 + $0x18] sm:$0xf0]  ;;  %v1072_v17 = vor.u32 %v1328_v9, %v1071_v8 }
  0x57   : > { %v1343_v15 = vld [vmem:[%s1898_s28 + $0x94] sm:$0xf]  ;;  %v1137_v16 = vld [vmem:[%s1898_s28 + $0x98] sm:$0xf0]  ;;  %v1063_v18 = vld [vmem:[%s1898_s28] sm:$0xf]  ;;  %v1136_v19 = vor.u32 %v1344_v12, %v1135_v10  ;;  %v1076_v20 = vor.u32 %v1327_v13, %v1073_v14 }
  0x58   : > { %581 = vmatpush.bf16.msra.mxu0 %v1088_v57  ;;  %v1326_v21 = vld [vmem:[%s1898_s28 + $0x4] sm:$0xf0]  ;;  %v1127_v22 = vld [vmem:[%s1898_s28 + $0x80] sm:$0xf]  ;;  %v1140_v24 = vor.u32 %v1343_v15, %v1137_v16  ;;  %v1325_v25 = vld [vmem:[%s1898_s28 + $0x4] sm:$0xf] }
  0x59   : > { %594 = vmatpush.bf16.msra.mxu1 %v1152_v58  ;;  %607 = vmatpush.bf16.msra.mxu2 %v1092_v59  ;;  %v1342_v23 = vld [vmem:[%s1898_s28 + $0x84] sm:$0xf0]  ;;  %v1065_v26 = vld [vmem:[%s1898_s28 + $0x8] sm:$0xf0]  ;;  %v1341_v27 = vld [vmem:[%s1898_s28 + $0x84] sm:$0xf]  ;;  %v1064_v31 = vor.u32 %v1326_v21, %v1063_v18 }
  0x5a   : > { %620 = vmatpush.bf16.msra.mxu3 %v1156_v63  ;;  %v1129_v28 = vld [vmem:[%s1898_s28 + $0x88] sm:$0xf0]  ;;  %v1247_v29 = vld [vmem:[%s1907_s29 + $0x70] sm:$0xf]  ;;  %v1372_v30 = vld [vmem:[%s1907_s29 + $0x74] sm:$0xf0]  ;;  %v1128_v35 = vor.u32 %v1342_v23, %v1127_v22  ;;  %v1068_v36 = vor.u32 %v1325_v25, %v1065_v26 }
  0x5b   : > { %v375_v32 = vld [vmem:[#allocation3] sm:$0xff]  ;;  %v1371_v33 = vld [vmem:[%s1907_s29 + $0x74] sm:$0xf]  ;;  %v1249_v34 = vld [vmem:[%s1907_s29 + $0x78] sm:$0xf0]  ;;  %v1132_v38 = vor.u32 %v1341_v27, %v1129_v28  ;;  %v1248_v39 = vor.u32 %v1372_v30, %v1247_v29  ;;  %p1317_p2 = scmp.ne.s32.totalorder %s1722_s21, 3 }
  0x5c   : > { %582 = vmatpush.bf16.msra.mxu0 %v1080_v5  ;;  %v376_v37 = vld [vmem:[#allocation3 + $0x8] sm:$0xff]  ;;  %v1239_v40 = vld [vmem:[%s1907_s29 + $0x60] sm:$0xf]  ;;  %v1311_v41 = vld [vmem:[%s1907_s29 + $0xf0] sm:$0xf]  ;;  %v377_v43 = vpack.c.bf16 %v375_v32, %v375_v32  ;;  %v1252_v44 = vor.u32 %v1371_v33, %v1249_v34 }
  0x5d   : > { %595 = vmatpush.bf16.msra.mxu1 %v1144_v6  ;;  %608 = vmatpush.bf16.msra.mxu2 %v1084_v7  ;;  %v1388_v42 = vld [vmem:[%s1907_s29 + $0xf4] sm:$0xf0]  ;;  %v1370_v45 = vld [vmem:[%s1907_s29 + $0x64] sm:$0xf0]  ;;  %v1387_v46 = vld [vmem:[%s1907_s29 + $0xf4] sm:$0xf]  ;;  %v378_v48 = vpack.c.bf16 %v376_v37, %v376_v37 }
  0x5e   : > { %621 = vmatpush.bf16.msra.mxu3 %v1148_v11  ;;  %v1313_v47 = vld [vmem:[%s1907_s29 + $0xf8] sm:$0xf0]  ;;  %v1369_v49 = vld [vmem:[%s1907_s29 + $0x64] sm:$0xf]  ;;  %v1241_v50 = vld [vmem:[%s1907_s29 + $0x68] sm:$0xf0]  ;;  %v1312_v51 = vor.u32 %v1388_v42, %v1311_v41  ;;  %v1240_v52 = vor.u32 %v1370_v45, %v1239_v40 }
  0x5f   : > { %v1316_v53 = vor.u32 %v1387_v46, %v1313_v47  ;;  %v1231_v54 = vld [vmem:[%s1907_s29 + $0x50] sm:$0xf]  ;;  %v1303_v55 = vld [vmem:[%s1907_s29 + $0xe0] sm:$0xf]  ;;  %v1386_v56 = vld [vmem:[%s1907_s29 + $0xe4] sm:$0xf0]  ;;  %v1244_v57 = vor.u32 %v1369_v49, %v1241_v50 }
  0x60   : > { %583 = vmatpush.bf16.msra.mxu0 %v1072_v17  ;;  %v1368_v58 = vld [vmem:[%s1907_s29 + $0x54] sm:$0xf0]  ;;  %v1385_v59 = vld [vmem:[%s1907_s29 + $0xe4] sm:$0xf]  ;;  %v1305_v60 = vld [vmem:[%s1907_s29 + $0xe8] sm:$0xf0]  ;;  %v1304_v63 = vor.u32 %v1386_v56, %v1303_v55 }
  0x61   : > { %596 = vmatpush.bf16.msra.mxu1 %v1136_v19  ;;  %609 = vmatpush.bf16.msra.mxu2 %v1076_v20  ;;  %v1367_v61 = vld [vmem:[%s1907_s29 + $0x54] sm:$0xf]  ;;  %v1233_v62 = vld [vmem:[%s1907_s29 + $0x58] sm:$0xf0]  ;;  %v1232_v0 = vor.u32 %v1368_v58, %v1231_v54  ;;  %v1308_v1 = vor.u32 %v1385_v59, %v1305_v60  ;;  %v1223_v2 = vld [vmem:[%s1907_s29 + $0x40] sm:$0xf] }
  0x62   : > { %622 = vmatpush.bf16.msra.mxu3 %v1140_v24  ;;  %v1295_v3 = vld [vmem:[%s1907_s29 + $0xd0] sm:$0xf]  ;;  %v1384_v4 = vld [vmem:[%s1907_s29 + $0xd4] sm:$0xf0]  ;;  %v1236_v5 = vor.u32 %v1367_v61, %v1233_v62  ;;  %v1366_v6 = vld [vmem:[%s1907_s29 + $0x44] sm:$0xf0] }
  0x63   : > { %v1383_v7 = vld [vmem:[%s1907_s29 + $0xd4] sm:$0xf]  ;;  %v1297_v8 = vld [vmem:[%s1907_s29 + $0xd8] sm:$0xf0]  ;;  %v1365_v9 = vld [vmem:[%s1907_s29 + $0x44] sm:$0xf]  ;;  %v1296_v11 = vor.u32 %v1384_v4, %v1295_v3  ;;  %v1224_v12 = vor.u32 %v1366_v6, %v1223_v2 }
  0x64   : > { %584 = vmatpush.bf16.msra.mxu0 %v1064_v31  ;;  %v1225_v10 = vld [vmem:[%s1907_s29 + $0x48] sm:$0xf0]  ;;  %v1300_v13 = vor.u32 %v1383_v7, %v1297_v8  ;;  %v1215_v14 = vld [vmem:[%s1907_s29 + $0x30] sm:$0xf]  ;;  %v1287_v15 = vld [vmem:[%s1907_s29 + $0xc0] sm:$0xf] }
  0x65   : > { %597 = vmatpush.bf16.msra.mxu1 %v1128_v35  ;;  %610 = vmatpush.bf16.msra.mxu2 %v1068_v36  ;;  %v1382_v16 = vld [vmem:[%s1907_s29 + $0xc4] sm:$0xf0]  ;;  %v1228_v17 = vor.u32 %v1365_v9, %v1225_v10  ;;  %v1364_v18 = vld [vmem:[%s1907_s29 + $0x34] sm:$0xf0]  ;;  %v1381_v19 = vld [vmem:[%s1907_s29 + $0xc4] sm:$0xf] }
  0x66   : > { %623 = vmatpush.bf16.msra.mxu3 %v1132_v38  ;;  %v1289_v20 = vld [vmem:[%s1907_s29 + $0xc8] sm:$0xf0]  ;;  %v1363_v21 = vld [vmem:[%s1907_s29 + $0x34] sm:$0xf]  ;;  %v1217_v22 = vld [vmem:[%s1907_s29 + $0x38] sm:$0xf0]  ;;  %v1288_v23 = vor.u32 %v1382_v16, %v1287_v15  ;;  %v1216_v24 = vor.u32 %v1364_v18, %v1215_v14 }
  0x67   : > { %585 = vmatmul.bf16.vlgmr.msra.gmra.mxu0 %v377_v43  ;;  %v1292_v25 = vor.u32 %v1381_v19, %v1289_v20  ;;  %v1220_v26 = vor.u32 %v1363_v21, %v1217_v22  ;;  %v1207_v27 = vld [vmem:[%s1907_s29 + $0x20] sm:$0xf]  ;;  %v1362_v28 = vld [vmem:[%s1907_s29 + $0x24] sm:$0xf0]  ;;  %v1361_v29 = vld [vmem:[%s1907_s29 + $0x24] sm:$0xf] }
  0x68   : > { %827 = vmatpush.bf16.msrb.mxu0 %v1248_v39  ;;  %598 = vmatmul.bf16.vlgmr.msra.gmra.mxu1 %v378_v48  ;;  %v1209_v30 = vld [vmem:[%s1907_s29 + $0x28] sm:$0xf0]  ;;  %v1208_v31 = vor.u32 %v1362_v28, %v1207_v27  ;;  %v1279_v33 = vld [vmem:[%s1907_s29 + $0xb0] sm:$0xf]  ;;  %v1380_v34 = vld [vmem:[%s1907_s29 + $0xb4] sm:$0xf0] }
  0x69   : > { %853 = vmatpush.bf16.msrb.mxu2 %v1252_v44  ;;  %624 = vmatmul.bf16.vlgmr.msra.gmra.mxu3 %v378_v48  ;;  %v1212_v32 = vor.u32 %v1361_v29, %v1209_v30  ;;  %v1379_v35 = vld [vmem:[%s1907_s29 + $0xb4] sm:$0xf]  ;;  %v1280_v36 = vor.u32 %v1380_v34, %v1279_v33  ;;  %v1281_v37 = vld [vmem:[%s1907_s29 + $0xb8] sm:$0xf0]  ;;  %v1199_v39 = vld [vmem:[%s1907_s29 + $0x10] sm:$0xf] }
  0x6a   : > { %611 = vmatmul.bf16.vlgmr.msra.gmra.mxu2 %v377_v43  ;;  %840 = vmatpush.bf16.msrb.mxu1 %v1312_v51  ;;  %v1284_v38 = vor.u32 %v1379_v35, %v1281_v37  ;;  %v1360_v40 = vld [vmem:[%s1907_s29 + $0x14] sm:$0xf0]  ;;  %v1359_v41 = vld [vmem:[%s1907_s29 + $0x14] sm:$0xf]  ;;  %v1201_v43 = vld [vmem:[%s1907_s29 + $0x18] sm:$0xf0] }
  0x6b   : > { %866 = vmatpush.bf16.msrb.mxu3 %v1316_v53  ;;  %v1200_v42 = vor.u32 %v1360_v40, %v1199_v39  ;;  %v1204_v44 = vor.u32 %v1359_v41, %v1201_v43  ;;  %v1271_v45 = vld [vmem:[%s1907_s29 + $0xa0] sm:$0xf]  ;;  %v1378_v46 = vld [vmem:[%s1907_s29 + $0xa4] sm:$0xf0]  ;;  %v1377_v47 = vld [vmem:[%s1907_s29 + $0xa4] sm:$0xf] }
  0x6c   : > { %828 = vmatpush.bf16.msrb.mxu0 %v1240_v52  ;;  %v1272_v48 = vor.u32 %v1378_v46, %v1271_v45  ;;  %v1273_v49 = vld [vmem:[%s1907_s29 + $0xa8] sm:$0xf0]  ;;  %v1191_v51 = vld [vmem:[%s1907_s29] sm:$0xf]  ;;  %v1358_v52 = vld [vmem:[%s1907_s29 + $0x4] sm:$0xf0] }
  0x6d   : > { %854 = vmatpush.bf16.msrb.mxu2 %v1244_v57  ;;  %v1276_v50 = vor.u32 %v1377_v47, %v1273_v49  ;;  %v1357_v53 = vld [vmem:[%s1907_s29 + $0x4] sm:$0xf]  ;;  %v1192_v54 = vor.u32 %v1358_v52, %v1191_v51  ;;  %v1193_v55 = vld [vmem:[%s1907_s29 + $0x8] sm:$0xf0]  ;;  %v1263_v57 = vld [vmem:[%s1907_s29 + $0x90] sm:$0xf] }
  0x6e   : > { %841 = vmatpush.bf16.msrb.mxu1 %v1304_v63  ;;  %v1196_v56 = vor.u32 %v1357_v53, %v1193_v55  ;;  %v1376_v58 = vld [vmem:[%s1907_s29 + $0x94] sm:$0xf0]  ;;  %v1375_v60 = vld [vmem:[%s1907_s29 + $0x94] sm:$0xf]  ;;  %v1265_v61 = vld [vmem:[%s1907_s29 + $0x98] sm:$0xf0] }
  0x6f   : > { %867 = vmatpush.bf16.msrb.mxu3 %v1308_v1  ;;  %v1264_v59 = vor.u32 %v1376_v58, %v1263_v57  ;;  %v1268_v62 = vor.u32 %v1375_v60, %v1265_v61  ;;  %v1255_v63 = vld [vmem:[%s1907_s29 + $0x80] sm:$0xf]  ;;  %v1373_v1 = vld [vmem:[%s1907_s29 + $0x84] sm:$0xf]  ;;  %v1257_v3 = vld [vmem:[%s1907_s29 + $0x88] sm:$0xf0] }
  0x70   : > { %829 = vmatpush.bf16.msrb.mxu0 %v1232_v0  ;;  %v1374_v0 = vld [vmem:[%s1907_s29 + $0x84] sm:$0xf0]  ;;  %v1260_v4 = vor.u32 %v1373_v1, %v1257_v3 }
  0x71   : > { %855 = vmatpush.bf16.msrb.mxu2 %v1236_v5  ;;  %v1256_v2 = vor.u32 %v1374_v0, %v1255_v63  ;;  %v411_v5 = vld [vmem:[%s318_s15] sm:$0x3] }
  0x72   : > { %842 = vmatpush.bf16.msrb.mxu1 %v1296_v11  ;;  %v413_v6 = vperm.slane %v411_v5, 0  ;;  %v414_v11 = vperm.slane %v411_v5, 1 }
  0x73   : > { %868 = vmatpush.bf16.msrb.mxu3 %v1300_v13 }
  0x74   : > { %830 = vmatpush.bf16.msrb.mxu0 %v1224_v12 }
  0x75   : > { %856 = vmatpush.bf16.msrb.mxu2 %v1228_v17 }
  0x76   : > { %843 = vmatpush.bf16.msrb.mxu1 %v1288_v23 }
  0x77   : > { %869 = vmatpush.bf16.msrb.mxu3 %v1292_v25 }
  0x78   : > { %831 = vmatpush.bf16.msrb.mxu0 %v1216_v24 }
  0x79   : > { %857 = vmatpush.bf16.msrb.mxu2 %v1220_v26  ;;  %v631_v26 = vld [vmem:[#allocation2] sm:$0xff] }
  0x7a   : > { %844 = vmatpush.bf16.msrb.mxu1 %v1280_v36 }
  0x7b   : > { %870 = vmatpush.bf16.msrb.mxu3 %v1284_v38 }
  0x7c   : > { %832 = vmatpush.bf16.msrb.mxu0 %v1208_v31  ;;  %v632_v31 = vld [vmem:[#allocation2 + $0x8] sm:$0xff] }
  0x7d   : > { %858 = vmatpush.bf16.msrb.mxu2 %v1212_v32 }
  0x7e   : > { %845 = vmatpush.bf16.msrb.mxu1 %v1272_v48 }
  0x7f   : > { %871 = vmatpush.bf16.msrb.mxu3 %v1276_v50 }
  0x80   : > { %833 = vmatpush.bf16.msrb.mxu0 %v1200_v42 }
  0x81   : > { %859 = vmatpush.bf16.msrb.mxu2 %v1204_v44 }
  0x82   : > { %846 = vmatpush.bf16.msrb.mxu1 %v1264_v59 }
  0x83   : > { %872 = vmatpush.bf16.msrb.mxu3 %v1268_v62 }
  0x84   : > { %834 = vmatpush.bf16.msrb.mxu0 %v1192_v54 }
  0x85   : > { %860 = vmatpush.bf16.msrb.mxu2 %v1196_v56 }
  0x86   : > { %847 = vmatpush.bf16.msrb.mxu1 %v1256_v2 }
  0x87   : > { %873 = vmatpush.bf16.msrb.mxu3 %v1260_v4 }
  0xe4   : > { %v586_v7 = vpop.f32.mrf.mxu0 }
  0xe5   : > { %v587_v8 = vadd.f32 %v586_v7, %v413_v6  ;;  %v599_v9 = vpop.f32.mrf.mxu1 }
  0xe7   : > { %v600_v10 = vadd.f32 %v599_v9, %v587_v8 }
  0xe9   : > { %v629_v12 = vmax.f32 %v600_v10, 0.0 }
  0xeb   : > { %v633_v13 = vpack.c.bf16 %v629_v12, %v629_v12 }
  0xec   : > { %v625_v16 = vpop.f32.mrf.mxu3  ;;  %v588_v17 = vpop.f32.mrf.mxu0 }
  0xed   : > { %v612_v14 = vpop.f32.mrf.mxu2  ;;  %v601_v18 = vpop.f32.mrf.mxu1  ;;  %835 = vmatmul.bf16.vlgmr.msrb.gmra.mxu0 %v633_v13  ;;  %861 = vmatmul.bf16.vlgmr.msrb.gmra.mxu2 %v633_v13 }
  0xee   : > { %v613_v15 = vadd.f32 %v612_v14, %v414_v11 }
  0xf0   : > { %v626_v19 = vadd.f32 %v625_v16, %v613_v15 }
  0xf2   : > { %v630_v20 = vmax.f32 %v626_v19, 0.0 }
  0xf4   : > { %v634_v21 = vpack.c.bf16 %v630_v20, %v630_v20  ;;  %v627_v23 = vpop.f32.mrf.mxu3 }
  0xf5   : > { %v614_v22 = vpop.f32.mrf.mxu2 }
  0xf6   : > { %848 = vmatmul.bf16.vlgmr.msrb.gmra.mxu1 %v634_v21  ;;  %874 = vmatmul.bf16.vlgmr.msrb.gmra.mxu3 %v634_v21 }
 0x16a   : > { %v836_v24 = vpop.f32.mrf.mxu0 }
 0x170   : > { %v862_v25 = vpop.f32.mrf.mxu2 }
 0x172   : > { %v838_v29 = vpop.f32.mrf.mxu0 }
 0x173   : > { %v849_v27 = vpop.f32.mrf.mxu1 }
 0x174   : > { %v850_v28 = vadd.f32 %v849_v27, %v836_v24 }
 0x176   : > { %v879_v30 = vadd.f32 %v850_v28, %v631_v26 }
 0x178   : > { %881 = vst [vmem:[#allocation2] sm:$0xff] %v879_v30  ;;  %v864_v34 = vpop.f32.mrf.mxu2 }
 0x179   : > { %v875_v32 = vpop.f32.mrf.mxu3 }
 0x17a   : > { %v876_v33 = vadd.f32 %v875_v32, %v862_v25 }
 0x17b   : > { %v851_v35 = vpop.f32.mrf.mxu1 }
 0x17c   : > { %v880_v36 = vadd.f32 %v876_v33, %v632_v31 }
 0x17d   : > { %886 = sbr.rel (%p1317_p2) target bundleno = 396 (0x18c), region = 68 }
 0x17e   : > { %882 = vst [vmem:[#allocation2 + $0x8] sm:$0xff] %v880_v36 }
 0x181   : > { %v877_v37 = vpop.f32.mrf.mxu3 }
 0x182   : > { %v887_v38 = vld [vmem:[#allocation2] sm:$0xff] }
 0x183   : > { %v889_v39 = vld [vmem:[#allocation11] sm:$0x3] }
 0x184   : > { %v891_v41 = vperm.slane %v889_v39, 0  ;;  %v892_v42 = vperm.slane %v889_v39, 1 }
 0x185   : > { %v888_v40 = vld [vmem:[#allocation2 + $0x8] sm:$0xff] }
 0x186   : > { %v895_v43 = vadd.f32 %v891_v41, %v887_v38  ;;  %v896_v44 = vadd.f32 %v892_v42, %v888_v40 }
 0x188   : > { %v897_v45 = vmax.f32 %v895_v43, 0.0  ;;  %v898_v46 = vmax.f32 %v896_v44, 0.0 }
 0x18a   : > { %899 = vst [vmem:[#allocation12] sm:$0xff] %v897_v45 }
 0x18b   : > { %900 = vst [vmem:[#allocation12 + $0x8] sm:$0xff] %v898_v46 }
 0x18c PF: > { %p1429_p3 = scmp.eq.s32.totalorder %s1798_s24, 3  ;;  %s912_s16 = sshll.u32 %s2076_s5, 4  ;;  %s913_s16 = int_to_ptr.hbm [resolvable:$true] %s912_s16 }
 0x18d   : > { %s1738_s21 = smov [#allocation12]  }
 0x18e   : > { %s910_s13 = sshll.u32 %s1738_s21, 4  ;;  %s911_s13 = int_to_ptr.vmem [resolvable:$true] %s910_s13 }
 0x18f   : > { %1404 = dma.vmem_to_hbm [thread:$0]  (%p1429_p3), %s911_s13, 256, %s913_s16, [#allocation5]  }
 0x190   : > { %1705 = dma.done.wait (%p1429_p3), [#allocation5], 256  }
 0x191   : > { %1707 = vsyncadd (%p1429_p3), [#allocation5], 4294967040 }
 0x192 PF: > { %s23_s23 = sadd.s32 1, %s1730_s23   ;;  %s2095_s17 = sld [smem:[#allocation19_spill]] }
 0x193   : > { %p20_p4 = scmp.ge.s32.totalorder %s23_s23, 6   ;;  %s2096_s24 = sld [smem:[#allocation18_spill]] }
 0x194   : > { %s2097_s18 = smov %s1714_s19  ;;  %s2098_s19 = smov %s1718_s20 }
 0x195   : > { %s2100_s21 = smov %s1726_s22  ;;  %22 = sbr.rel (!%p20_p4) target bundleno = 11 (0xb), region = 120 }
 0x198   : > { %s2099_s20 = smov %s2095_s17 }
 0x199   : > { %s2101_s22 = smov %s2096_s24 }
 0x19a   :  { %926 = vsyncpa [#allocation4], 1 }
 0x19b   :  { %928 = vsyncpa [#allocation4 + $0x1], 1 }
 0x19c   :  { %929 = vsyncpa [#allocation7], 1 }
 0x19d   :  { %931 = vsyncpa [#allocation7 + $0x1], 1 }
 0x19e   :  { %932 = vsyncpa [#allocation10], 1 }
 0x19f   :  { %934 = vsyncpa [#allocation10 + $0x1], 1 }
 0x1a0   :  { %935 = vsyncpa [#allocation5], 1 }
 0x1a1   :  { %937 = vsyncpa [#allocation5 + $0x1], 1 }

</bundles_post_ra>
